<compile_context>
chip_gen: v6e
topology: v6e:2x2x1
jax: 0.10.0
libtpu: 0.0.40
codegen_flags: <defaults>
</compile_context>

<pallas_src>
import functools

import jax
import jax.numpy as jnp
from jax.experimental import pallas as pl
from jax.experimental.pallas import tpu as pltpu


_ROW_PAD = 16       # sublane multiple for bf16 activations
_K_TILE_MAX = 2048  # reduction-tile target (multiple of 128)


def _k_tiling(d):
    """Pick reduction tile tk (multiple of 128) and padded depth Dp (multiple of tk)."""
    dp128 = pl.cdiv(d, 128) * 128
    tk = min(_K_TILE_MAX, dp128)
    dp = pl.cdiv(d, tk) * tk
    return tk, dp


def _ensemble_softmax_kernel(idx_ref, x_ref, w_ref, b_ref, o_ref, acc_ref):
    # idx_ref : SMEM [1] int32   (scalar-prefetched model index; also drives index_maps)
    # x_ref   : VMEM [Bp, tk] bf16       K-slice of the flattened batch
    # w_ref   : VMEM [tk, C]  bf16       K-slice of the selected member's weights
    # b_ref   : VMEM [1, C]   f32        selected member's bias
    # o_ref   : VMEM [Bp, C]  f32        output (resident across the K grid)
    # acc_ref : VMEM [Bp, C]  f32        logits accumulator scratch
    k = pl.program_id(0)

    @pl.when(k == 0)
    def _():
        acc_ref[...] = jnp.zeros_like(acc_ref)

    acc_ref[...] += jnp.dot(x_ref[...], w_ref[...],
                            preferred_element_type=jnp.float32)

    @pl.when(k == pl.num_programs(0) - 1)
    def _():
        logits = acc_ref[...] + b_ref[...]                 # f32
        m = jnp.max(logits, axis=1, keepdims=True)         # stable softmax over dim=1
        e = jnp.exp(logits - m)
        s = jnp.sum(e, axis=1, keepdims=True)
        o_ref[...] = e * pl.reciprocal(s, approx=True)     # EUP reciprocal


@functools.partial(jax.jit, static_argnames=("tk",))
def _ensemble_linear_softmax(model_idx, x_flat, w_all, b_all, *, tk):
    """softmax(x_flat @ w_all[model_idx] + b_all[model_idx], axis=1)."""
    Bp, Dp = x_flat.shape
    _, _, C = w_all.shape
    n_k = Dp // tk
    return pl.pallas_call(
        _ensemble_softmax_kernel,
        out_shape=jax.ShapeDtypeStruct((Bp, C), jnp.float32),
        grid_spec=pltpu.PrefetchScalarGridSpec(
            num_scalar_prefetch=1,
            grid=(n_k,),
            in_specs=[
                pl.BlockSpec((Bp, tk), lambda k, idx: (0, k)),
                pl.BlockSpec((None, tk, C), lambda k, idx: (idx[0], k, 0)),
                pl.BlockSpec((None, 1, C), lambda k, idx: (idx[0], 0, 0)),
            ],
            out_specs=pl.BlockSpec((Bp, C), lambda k, idx: (0, 0)),
            scratch_shapes=[pltpu.VMEM((Bp, C), jnp.float32)],
        ),
        compiler_params=pltpu.CompilerParams(
            dimension_semantics=("arbitrary",),      # K is a reduction axis
            vmem_limit_bytes=32 * 1024 * 1024,       # safe on v5e/v6e/v7x
        ),
    )(model_idx, x_flat, w_all, b_all)


class EnsembleForSaliencyMemorySave:
    """Stateful round-robin member selection + softmax(member(x), dim=1)."""

    def __init__(self, w_all, b_all, num_classes):
        # w_all: [num_models, Dp, C] bf16 (reduction dim zero-padded to Dp)
        # b_all: [num_models, 1, C]  f32
        self.w_all = w_all
        self.b_all = b_all
        self.num_classes = num_classes
        self.num_models = w_all.shape[0]
        self.dp = w_all.shape[1]
        self.tk = _k_tiling(self.dp)[0]
        self.model_idx = 0

    def __call__(self, x):
        # x: [B, C, H, W] (NCHW)
        B = x.shape[0]
        D = x.shape[1] * x.shape[2] * x.shape[3]
        Bp = pl.cdiv(B, _ROW_PAD) * _ROW_PAD
        x_flat = x.reshape(B, D)
        x_flat = jnp.pad(x_flat, ((0, Bp - B), (0, self.dp - D))).astype(jnp.bfloat16)

        idx = jnp.array([self.model_idx], dtype=jnp.int32)
        out_padded = _ensemble_linear_softmax(idx, x_flat, self.w_all, self.b_all,
                                              tk=self.tk)

        self.model_idx = (self.model_idx + 1) % self.num_models
        return out_padded[:B]


def _make_stacked_params(key, d_in, num_classes, num_models):
    """Deterministic synthetic linear-classifier members, stacked and K-padded."""
    _, dp = _k_tiling(d_in)
    keys = jax.random.split(key, num_models)
    ws, bs = [], []
    for k in keys:
        kw, kb = jax.random.split(k)
        w = jax.random.normal(kw, (d_in, num_classes), jnp.float32) * 0.02
        b = jax.random.normal(kb, (num_classes,), jnp.float32) * 0.02
        w = jnp.pad(w, ((0, dp - d_in), (0, 0)))          # zero-pad K -> no garbage acc
        ws.append(w.astype(jnp.bfloat16))
        bs.append(b.reshape(1, num_classes))
    w_all = jnp.stack(ws)                                  # [M, Dp, C] bf16
    b_all = jnp.stack(bs).astype(jnp.float32)              # [M, 1, C]  f32
    return w_all, b_all


if __name__ == "__main__":
    # Small shapes consistent with the forward: NCHW image batch.
    B, C, H, W = 2, 4, 16, 16
    NUM_CLASSES = 10
    NUM_MODELS = 3
    D = C * H * W

    key = jax.random.PRNGKey(0)
    kx, kparams = jax.random.split(key)
    x = jax.random.normal(kx, (B, C, H, W), jnp.float32)

    w_all, b_all = _make_stacked_params(kparams, D, NUM_CLASSES, NUM_MODELS)
    ensemble = EnsembleForSaliencyMemorySave(w_all, b_all, NUM_CLASSES)

    # Reference uses the same bf16-quantized weights/activations, f32 accumulation.
    x_ref32 = x.reshape(B, D).astype(jnp.bfloat16).astype(jnp.float32)

    outs = []
    for m in range(NUM_MODELS):
        out = jax.block_until_ready(ensemble(x))           # uses member m, advances idx
        outs.append(out)
        wm = w_all[m, :D, :].astype(jnp.float32)
        bm = b_all[m, 0, :]
        ref = jax.nn.softmax(x_ref32 @ wm + bm, axis=1)
        assert out.shape == (B, NUM_CLASSES)
        assert jnp.allclose(out, ref, atol=5e-3, rtol=5e-3)
        assert jnp.allclose(jnp.sum(out, axis=1), 1.0, atol=5e-3)

    # Stateful round-robin: cycled through every member and wrapped back to 0.
    assert ensemble.model_idx == 0
    # Member selection via scalar prefetch really switches weights.
    assert not jnp.allclose(outs[0], outs[1], atol=1e-3)

    print("KERNEL_OK")
</pallas_src>

<mosaic_0001>
module attributes {stable_mosaic.version = 11 : i64} {
  func.func @_ensemble_softmax_kernel(%arg0: i32, %arg1: memref<1xi32, #tpu.memory_space<smem>>, %arg2: memref<16x1024xbf16, #tpu.memory_space<vmem>>, %arg3: memref<1x1024x10xbf16, #tpu.memory_space<vmem>>, %arg4: memref<1x1x10xf32, #tpu.memory_space<vmem>>, %arg5: memref<16x10xf32, #tpu.memory_space<vmem>>, %arg6: memref<16x10xf32, #tpu.memory_space<vmem>>) attributes {dimension_semantics = [#tpu.dimension_semantics<arbitrary>], iteration_bounds = array<i64: 1>, scalar_prefetch = 1 : i64, scratch_operands = 1 : i64, tpu.core_type = #tpu.core_type<tc>, window_params = [{transform_indices = @transform_0, window_bounds = array<i64: 16, 1024>}, {transform_indices = @transform_1, window_bounds = array<i64: 1, 1024, 10>}, {transform_indices = @transform_2, window_bounds = array<i64: 1, 1, 10>}, {pipeline_mode = #tpu.pipeline_mode<synchronous>, transform_indices = @transform_3, window_bounds = array<i64: 16, 10>}]} {
    %c0_i32 = arith.constant 0 : i32
    %0 = arith.cmpi eq, %arg0, %c0_i32 : i32
    %1 = arith.extui %0 : i1 to i32
    %c0_i32_0 = arith.constant 0 : i32
    %2 = arith.cmpi ne, %1, %c0_i32_0 : i32
    scf.if %2 {
      %cst_11 = arith.constant 0.000000e+00 : f32
      %13 = vector.broadcast %cst_11 : f32 to vector<16x10xf32>
      %c0_12 = arith.constant 0 : index
      %c0_13 = arith.constant 0 : index
      %14 = vector.load %arg6[%c0_12, %c0_13] : memref<16x10xf32, #tpu.memory_space<vmem>>, vector<16x10xf32>
      tpu.vector_store %arg6[%c0_12, %c0_13], %13 {strides = array<i32>} : memref<16x10xf32, #tpu.memory_space<vmem>>, vector<16x10xf32>,
    } else {
    }
    %c0 = arith.constant 0 : index
    %c0_1 = arith.constant 0 : index
    %3 = vector.load %arg6[%c0, %c0_1] : memref<16x10xf32, #tpu.memory_space<vmem>>, vector<16x10xf32>
    %c0_2 = arith.constant 0 : index
    %c0_3 = arith.constant 0 : index
    %4 = vector.load %arg2[%c0_2, %c0_3] : memref<16x1024xbf16, #tpu.memory_space<vmem>>, vector<16x1024xbf16>
    %c0_4 = arith.constant 0 : index
    %c0_5 = arith.constant 0 : index
    %c0_6 = arith.constant 0 : index
    %5 = vector.load %arg3[%c0_4, %c0_5, %c0_6] : memref<1x1024x10xbf16, #tpu.memory_space<vmem>>, vector<1x1024x10xbf16>
    %6 = vector.shape_cast %5 : vector<1x1024x10xbf16> to vector<1024x10xbf16>
    %cst = arith.constant dense<0.000000e+00> : vector<16x10xf32>
    %7 = tpu.matmul %4, %6, %cst {dimension_numbers = #tpu.dot_dimension_numbers<[1], [0], [0], [1], [0, 0, 1, 1], [], []>} : vector<16x1024xbf16>, vector<1024x10xbf16>, vector<16x10xf32> -> vector<16x10xf32>
    %8 = arith.addf %3, %7 : vector<16x10xf32>
    %c0_7 = arith.constant 0 : index
    %c0_8 = arith.constant 0 : index
    %9 = vector.load %arg6[%c0_7, %c0_8] : memref<16x10xf32, #tpu.memory_space<vmem>>, vector<16x10xf32>
    tpu.vector_store %arg6[%c0_7, %c0_8], %8 {strides = array<i32>} : memref<16x10xf32, #tpu.memory_space<vmem>>, vector<16x10xf32>,
    %c0_i32_9 = arith.constant 0 : i32
    %10 = arith.cmpi eq, %arg0, %c0_i32_9 : i32
    %11 = arith.extui %10 : i1 to i32
    %c0_i32_10 = arith.constant 0 : i32
    %12 = arith.cmpi ne, %11, %c0_i32_10 : i32
    scf.if %12 {
      %c0_11 = arith.constant 0 : index
      %c0_12 = arith.constant 0 : index
      %13 = vector.load %arg6[%c0_11, %c0_12] : memref<16x10xf32, #tpu.memory_space<vmem>>, vector<16x10xf32>
      %c0_13 = arith.constant 0 : index
      %c0_14 = arith.constant 0 : index
      %c0_15 = arith.constant 0 : index
      %14 = vector.load %arg4[%c0_13, %c0_14, %c0_15] : memref<1x1x10xf32, #tpu.memory_space<vmem>>, vector<1x1x10xf32>
      %15 = vector.shape_cast %14 : vector<1x1x10xf32> to vector<1x10xf32>
      %16 = vector.broadcast %15 : vector<1x10xf32> to vector<16x10xf32>
      %17 = arith.addf %13, %16 : vector<16x10xf32>
      %cst_16 = arith.constant dense<0xFF800000> : vector<16xf32>
      %18 = vector.multi_reduction <maximumf>, %17, %cst_16 [1] : vector<16x10xf32> to vector<16xf32>
      %19 = vector.shape_cast %18 : vector<16xf32> to vector<16x1xf32>
      %20 = vector.broadcast %19 : vector<16x1xf32> to vector<16x10xf32>
      %21 = arith.subf %17, %20 : vector<16x10xf32>
      %22 = math.exp %21 : vector<16x10xf32>
      %cst_17 = arith.constant dense<0.000000e+00> : vector<16xf32>
      %23 = vector.multi_reduction <add>, %22, %cst_17 [1] : vector<16x10xf32> to vector<16xf32>
      %24 = vector.shape_cast %23 : vector<16xf32> to vector<16x1xf32>
      %25 = tpu.reciprocal %24 {approx = true} : vector<16x1xf32> -> vector<16x1xf32>
      %26 = vector.broadcast %25 : vector<16x1xf32> to vector<16x10xf32>
      %27 = arith.mulf %22, %26 : vector<16x10xf32>
      %c0_18 = arith.constant 0 : index
      %c0_19 = arith.constant 0 : index
      %28 = vector.load %arg5[%c0_18, %c0_19] : memref<16x10xf32, #tpu.memory_space<vmem>>, vector<16x10xf32>
      tpu.vector_store %arg5[%c0_18, %c0_19], %27 {strides = array<i32>} : memref<16x10xf32, #tpu.memory_space<vmem>>, vector<16x10xf32>,
    } else {
    }
    return
  }
  func.func @transform_0(%arg0: i32, %arg1: memref<1xi32, #tpu.memory_space<smem>>) -> (i32, i32) {
    %c0_i32 = arith.constant 0 : i32
    %c0_i32_0 = arith.constant 0 : i32
    return %c0_i32, %arg0 : i32, i32
  }
  func.func @transform_1(%arg0: i32, %arg1: memref<1xi32, #tpu.memory_space<smem>>) -> (i32, i32, i32) {
    %c0 = arith.constant 0 : index
    %0 = memref.load %arg1[%c0] : memref<1xi32, #tpu.memory_space<smem>>
    %c0_i32 = arith.constant 0 : i32
    %c0_i32_0 = arith.constant 0 : i32
    return %0, %arg0, %c0_i32 : i32, i32, i32
  }
  func.func @transform_2(%arg0: i32, %arg1: memref<1xi32, #tpu.memory_space<smem>>) -> (i32, i32, i32) {
    %c0 = arith.constant 0 : index
    %0 = memref.load %arg1[%c0] : memref<1xi32, #tpu.memory_space<smem>>
    %c0_i32 = arith.constant 0 : i32
    %c0_i32_0 = arith.constant 0 : i32
    %c0_i32_1 = arith.constant 0 : i32
    return %0, %c0_i32, %c0_i32_0 : i32, i32, i32
  }
  func.func @transform_3(%arg0: i32, %arg1: memref<1xi32, #tpu.memory_space<smem>>) -> (i32, i32) {
    %c0_i32 = arith.constant 0 : i32
    %c0_i32_0 = arith.constant 0 : i32
    %c0_i32_1 = arith.constant 0 : i32
    return %c0_i32, %c0_i32_0 : i32, i32
  }
}

</mosaic_0001>

<bundles_post_ra>
// kernel: _ensemble_linear_softmax.1
= control target key start
LH: loop header
LB: loop body
LE: loop exit
PB: predicated region body
PF: predicated region fallthrough
CT: control target
= control target key end

     0   :  { %s1295_s0 = inlined_call_operand.<no memory space> [shape: s32[1], index: 0, kind: input, shape index: {}]   ;;  %s1296_s1 = inlined_call_operand.vmem [shape: bf16[16,1024], index: 1, kind: input, shape index: {}]   ;;  %s1297_s2 = inlined_call_operand.vmem [shape: bf16[3,1024,10], index: 2, kind: input, shape index: {}]   ;;  %s1298_s3 = inlined_call_operand.vmem [shape: f32[3,1,10], index: 3, kind: input, shape index: {}]   ;;  %s1299_s4 = inlined_call_operand.hbm [shape: f32[16,10], index: 4, kind: output, shape index: {}]  }
   0x1   :  { %p40_p0 = scmp.lt.s32.totalorder %s1295_s0, 2  ;;  %v1150_v0 = vld [vmem:[%s1296_s1] sm:$0xff]  ;;  %v1160_v2 = vld [vmem:[%s1296_s1 + $0x8] sm:$0xff] }
   0x2   :  { %v1155_v1 = vld [vmem:[%s1296_s1 + $0x20] sm:$0xff]  ;;  %v1167_v4 = vld [vmem:[%s1296_s1 + $0x28] sm:$0xff] }
   0x3   :  { %v856_v3 = vcombine.high %v1150_v0, %v1155_v1  ;;  %s1301_s0 = smov (!%p40_p0, %s1295_s0), 2  ;;  %v858_v5 = vcombine.high %v1160_v2, %v1167_v4 }
   0x4   :  { %10 = vsyncpa [#allocation6], 0  ;;  %s928_s27 = sshll.u32 %s1301_s0, 9  ;;  %v1214_v35 = vld [vmem:[%s1296_s1 + $0x10] sm:$0xff]  ;;  %v1225_v38 = vld [vmem:[%s1296_s1 + $0x18] sm:$0xff]  ;;  %v855_v42 = vcombine.low %v1150_v0, %v1155_v1  ;;  %v857_v43 = vcombine.low %v1160_v2, %v1167_v4  ;;  %vm56_vm0 = vcmask 80896   ;;  %s49_s13 = scalar_lea.vmem %s1298_s3, %s1301_s0 }
   0x5   :  { %653 = vmatprep.mubr.bf16.mxu0 %v856_v3  ;;  %694 = vmatprep.mubr.bf16.mxu1 %v858_v5  ;;  %s1180_s30 = scalar_lea.vmem %s1297_s2, %s928_s27  ;;  %v1219_v36 = vld [vmem:[%s1296_s1 + $0x30] sm:$0xff]  ;;  %v1230_v39 = vld [vmem:[%s1296_s1 + $0x38] sm:$0xff]  ;;  %s1116_s0 = smov [#allocation5]  }
   0x6   :  { %v1021_v6 = vld [vmem:[%s1180_s30 + $0x78] sm:$0xff]   ;;  %v1025_v10 = vld [vmem:[%s1180_s30 + $0x70] sm:$0xff]   ;;  %v1029_v14 = vld [vmem:[%s1180_s30 + $0x68] sm:$0xff]   ;;  %v860_v46 = vcombine.high %v1214_v35, %v1219_v36  ;;  %v862_v48 = vcombine.high %v1225_v38, %v1230_v39  ;;  %s833_s3 = sshll.u32 %s1116_s0, 4  ;;  %s834_s3 = int_to_ptr.vmem [resolvable:$true] %s833_s3 }
   0x7   :  { %v1022_v7 = vld [vmem:[%s1180_s30 + $0xf8] sm:$0xff]   ;;  %929 = vmatprep.subr.bf16.mxu0 %v1021_v6  ;;  %v1026_v11 = vld [vmem:[%s1180_s30 + $0xf0] sm:$0xff]   ;;  %v1030_v15 = vld [vmem:[%s1180_s30 + $0xe8] sm:$0xff]   ;;  %s1093_s14 = scalar_lea.vmem %s834_s3, 256  ;;  %p1098_p2 = scmp.lt.s32.totalorder %s834_s3, %s834_s3 }
   0x8   :  { %v1023_v8 = vld [vmem:[%s1180_s30 + $0x38] sm:$0xff]   ;;  %951 = vmatprep.subr.bf16.mxu1 %v1022_v7  ;;  %v1027_v12 = vld [vmem:[%s1180_s30 + $0x30] sm:$0xff]   ;;  %v1031_v16 = vld [vmem:[%s1180_s30 + $0x28] sm:$0xff]   ;;  %p1094_p1 = scmp.ne.s32.totalorder %s834_s3, %s1093_s14  ;;  %p1099_p3 = scmp.lt.s32.totalorder %s1093_s14, %s1093_s14 }
   0x9   :  { %v1024_v9 = vld [vmem:[%s1180_s30 + $0xb8] sm:$0xff]   ;;  %930 = vmatpush3.bf16.msra.mxu0 %v1023_v8  ;;  %v1028_v13 = vld [vmem:[%s1180_s30 + $0xb0] sm:$0xff]   ;;  %v1032_v17 = vld [vmem:[%s1180_s30 + $0xa8] sm:$0xff]  }
   0xa   :  { %952 = vmatpush3.bf16.msra.mxu1 %v1024_v9  ;;  %931 = vmatprep.subr.bf16.mxu0 %v1025_v10  ;;  %v1033_v18 = vld [vmem:[%s1180_s30 + $0x60] sm:$0xff]   ;;  %v1037_v22 = vld [vmem:[%s1180_s30 + $0x58] sm:$0xff]   ;;  %v1041_v26 = vld [vmem:[%s1180_s30 + $0x50] sm:$0xff]   ;;  %p1100_p4 = por %p1099_p3, %p1098_p2 }
   0xb   :  { %953 = vmatprep.subr.bf16.mxu1 %v1026_v11  ;;  %v1034_v19 = vld [vmem:[%s1180_s30 + $0xe0] sm:$0xff]   ;;  %v1038_v23 = vld [vmem:[%s1180_s30 + $0xd8] sm:$0xff]   ;;  %v1042_v27 = vld [vmem:[%s1180_s30 + $0xd0] sm:$0xff]  }
   0xc   :  { %v1035_v20 = vld [vmem:[%s1180_s30 + $0x20] sm:$0xff]   ;;  %v1039_v24 = vld [vmem:[%s1180_s30 + $0x18] sm:$0xff]   ;;  %v1043_v28 = vld [vmem:[%s1180_s30 + $0x10] sm:$0xff]   ;;  %p1101_p5 = pnand %p1100_p4, %p1094_p1 }
   0xd   :  { %932 = vmatpush3.bf16.msra.mxu0 %v1027_v12  ;;  %v1036_v21 = vld [vmem:[%s1180_s30 + $0xa0] sm:$0xff]   ;;  %v1040_v25 = vld [vmem:[%s1180_s30 + $0x98] sm:$0xff]   ;;  %v1044_v29 = vld [vmem:[%s1180_s30 + $0x90] sm:$0xff]  }
   0xe   :  { %954 = vmatpush3.bf16.msra.mxu1 %v1028_v13  ;;  %933 = vmatprep.subr.bf16.mxu0 %v1029_v14  ;;  %v1045_v30 = vld [vmem:[%s1180_s30 + $0x48] sm:$0xff]   ;;  %v1049_v34 = vld [vmem:[%s1180_s30 + $0x40] sm:$0xff]   ;;  %v1053_v44 = vld [vmem:[%s1180_s30 + $0x178] sm:$0xff]   ;;  %v859_v14 = vcombine.low %v1214_v35, %v1219_v36 }
   0xf   :  { %955 = vmatprep.subr.bf16.mxu1 %v1030_v15  ;;  %v1046_v31 = vld [vmem:[%s1180_s30 + $0xc8] sm:$0xff]   ;;  %v1050_v37 = vld [vmem:[%s1180_s30 + $0xc0] sm:$0xff]   ;;  %v1054_v45 = vld [vmem:[%s1180_s30 + $0x1f8] sm:$0xff]   ;;  %v861_v15 = vcombine.low %v1225_v38, %v1230_v39 }
  0x10   :  { %v1047_v32 = vld [vmem:[%s1180_s30 + $0x8] sm:$0xff]   ;;  %v1051_v40 = vld [vmem:[%s1180_s30] sm:$0xff]   ;;  %v1055_v47 = vld [vmem:[%s1180_s30 + $0x138] sm:$0xff]  }
  0x11   :  { %934 = vmatpush3.bf16.msra.mxu0 %v1031_v16  ;;  %v1048_v33 = vld [vmem:[%s1180_s30 + $0x88] sm:$0xff]   ;;  %v1052_v41 = vld [vmem:[%s1180_s30 + $0x80] sm:$0xff]   ;;  %v1056_v49 = vld [vmem:[%s1180_s30 + $0x1b8] sm:$0xff]   ;;  %v1115_v16 = vmov 0.0  }
  0x12   :  { %956 = vmatpush3.bf16.msra.mxu1 %v1032_v17  ;;  %935 = vmatprep.subr.bf16.mxu0 %v1033_v18  ;;  %v1057_v50 = vld [vmem:[%s1180_s30 + $0x170] sm:$0xff]   ;;  %v1061_v54 = vld [vmem:[%s1180_s30 + $0x168] sm:$0xff]   ;;  %v1065_v58 = vld [vmem:[%s1180_s30 + $0x160] sm:$0xff]   ;;  %57 = vst.msk [vmem:[#allocation2] sm:$0xff] %vm56_vm0, %v1115_v16 }
  0x13   :  { %957 = vmatprep.subr.bf16.mxu1 %v1034_v19  ;;  %v1058_v51 = vld [vmem:[%s1180_s30 + $0x1f0] sm:$0xff]   ;;  %v1062_v55 = vld [vmem:[%s1180_s30 + $0x1e8] sm:$0xff]   ;;  %v1066_v59 = vld [vmem:[%s1180_s30 + $0x1e0] sm:$0xff]   ;;  %58 = vst.msk [vmem:[#allocation2 + $0x8] sm:$0xff] %vm56_vm0, %v1115_v16 }
  0x14   :  { %v1059_v52 = vld [vmem:[%s1180_s30 + $0x130] sm:$0xff]   ;;  %v1063_v56 = vld [vmem:[%s1180_s30 + $0x128] sm:$0xff]   ;;  %v1067_v60 = vld [vmem:[%s1180_s30 + $0x120] sm:$0xff]  }
  0x15   :  { %936 = vmatpush3.bf16.msra.mxu0 %v1035_v20  ;;  %v1060_v53 = vld [vmem:[%s1180_s30 + $0x1b0] sm:$0xff]   ;;  %v1064_v57 = vld [vmem:[%s1180_s30 + $0x1a8] sm:$0xff]   ;;  %v1068_v61 = vld [vmem:[%s1180_s30 + $0x1a0] sm:$0xff]  }
  0x16   :  { %958 = vmatpush3.bf16.msra.mxu1 %v1036_v21  ;;  %937 = vmatprep.subr.bf16.mxu0 %v1037_v22  ;;  %v1069_v62 = vld [vmem:[%s1180_s30 + $0x158] sm:$0xff]   ;;  %v1073_v2 = vld [vmem:[%s1180_s30 + $0x150] sm:$0xff]   ;;  %v1077_v6 = vld [vmem:[%s1180_s30 + $0x148] sm:$0xff]  }
  0x17   :  { %959 = vmatprep.subr.bf16.mxu1 %v1038_v23  ;;  %v1070_v63 = vld [vmem:[%s1180_s30 + $0x1d8] sm:$0xff]   ;;  %v1074_v3 = vld [vmem:[%s1180_s30 + $0x1d0] sm:$0xff]   ;;  %v1078_v7 = vld [vmem:[%s1180_s30 + $0x1c8] sm:$0xff]  }
  0x18   :  { %v1071_v0 = vld [vmem:[%s1180_s30 + $0x118] sm:$0xff]   ;;  %v1075_v4 = vld [vmem:[%s1180_s30 + $0x110] sm:$0xff]   ;;  %v1079_v8 = vld [vmem:[%s1180_s30 + $0x108] sm:$0xff]  }
  0x19   :  { %938 = vmatpush3.bf16.msra.mxu0 %v1039_v24  ;;  %v1072_v1 = vld [vmem:[%s1180_s30 + $0x198] sm:$0xff]   ;;  %v1076_v5 = vld [vmem:[%s1180_s30 + $0x190] sm:$0xff]   ;;  %v1080_v9 = vld [vmem:[%s1180_s30 + $0x188] sm:$0xff]  }
  0x1a   :  { %960 = vmatpush3.bf16.msra.mxu1 %v1040_v25  ;;  %939 = vmatprep.subr.bf16.mxu0 %v1041_v26  ;;  %v1081_v10 = vld [vmem:[%s1180_s30 + $0x140] sm:$0xff]  }
  0x1b   :  { %961 = vmatprep.subr.bf16.mxu1 %v1042_v27  ;;  %v1082_v11 = vld [vmem:[%s1180_s30 + $0x1c0] sm:$0xff]  }
  0x1c   :  { %v1083_v12 = vld [vmem:[%s1180_s30 + $0x100] sm:$0xff]  }
  0x1d   :  { %940 = vmatpush3.bf16.msra.mxu0 %v1043_v28  ;;  %v1084_v13 = vld [vmem:[%s1180_s30 + $0x180] sm:$0xff]  }
  0x1e   :  { %962 = vmatpush3.bf16.msra.mxu1 %v1044_v29  ;;  %941 = vmatprep.subr.bf16.mxu0 %v1045_v30  ;;  %v59_v39 = vld [vmem:[#allocation2] sm:$0xff] }
  0x1f   :  { %963 = vmatprep.subr.bf16.mxu1 %v1046_v31 }
  0x21   :  { %942 = vmatpush3.bf16.msra.mxu0 %v1047_v32 }
  0x22   :  { %964 = vmatpush3.bf16.msra.mxu1 %v1048_v33  ;;  %943 = vmatprep.subr.bf16.mxu0 %v1049_v34 }
  0x23   :  { %965 = vmatprep.subr.bf16.mxu1 %v1050_v37 }
  0x25   :  { %944 = vmatpush3.bf16.msra.mxu0 %v1051_v40 }
  0x26   :  { %966 = vmatpush3.bf16.msra.mxu1 %v1052_v41  ;;  %973 = vmatprep.subr.bf16.mxu0 %v1053_v44 }
  0x27   :  { %995 = vmatprep.subr.bf16.mxu1 %v1054_v45 }
  0x28   :  { %654 = vmatmul.mubr.bf16.vlgmr.msra.gmra.mxu0 %v855_v42 }
  0x29   :  { %695 = vmatmul.mubr.bf16.vlgmr.msra.gmra.mxu1 %v857_v43  ;;  %974 = vmatpush3.bf16.msra.mxu0 %v1055_v47 }
  0x2a   :  { %996 = vmatpush3.bf16.msra.mxu1 %v1056_v49  ;;  %735 = vmatprep.mubr.bf16.mxu0 %v860_v46 }
  0x2b   :  { %975 = vmatprep.subr.bf16.mxu0 %v1057_v50  ;;  %776 = vmatprep.mubr.bf16.mxu1 %v862_v48  ;;  %v60_v48 = vld [vmem:[#allocation2 + $0x8] sm:$0xff] }
  0x2c   :  { %997 = vmatprep.subr.bf16.mxu1 %v1058_v51  ;;  %v927_v51 = vld [vmem:[%s49_s13] ss:$0 sm:$0xff] }
  0x2d   :  { %976 = vmatpush3.bf16.msra.mxu0 %v1059_v52 }
  0x2e   :  { %998 = vmatpush3.bf16.msra.mxu1 %v1060_v53  ;;  %977 = vmatprep.subr.bf16.mxu0 %v1061_v54 }
  0x2f   :  { %999 = vmatprep.subr.bf16.mxu1 %v1062_v55 }
  0x31   :  { %978 = vmatpush3.bf16.msra.mxu0 %v1063_v56 }
  0x32   :  { %1000 = vmatpush3.bf16.msra.mxu1 %v1064_v57  ;;  %979 = vmatprep.subr.bf16.mxu0 %v1065_v58 }
  0x33   :  { %1001 = vmatprep.subr.bf16.mxu1 %v1066_v59 }
  0x35   :  { %980 = vmatpush3.bf16.msra.mxu0 %v1067_v60 }
  0x36   :  { %1002 = vmatpush3.bf16.msra.mxu1 %v1068_v61  ;;  %981 = vmatprep.subr.bf16.mxu0 %v1069_v62 }
  0x37   :  { %1003 = vmatprep.subr.bf16.mxu1 %v1070_v63 }
  0x39   :  { %982 = vmatpush3.bf16.msra.mxu0 %v1071_v0 }
  0x3a   :  { %1004 = vmatpush3.bf16.msra.mxu1 %v1072_v1  ;;  %983 = vmatprep.subr.bf16.mxu0 %v1073_v2 }
  0x3b   :  { %1005 = vmatprep.subr.bf16.mxu1 %v1074_v3 }
  0x3d   :  { %984 = vmatpush3.bf16.msra.mxu0 %v1075_v4 }
  0x3e   :  { %1006 = vmatpush3.bf16.msra.mxu1 %v1076_v5  ;;  %985 = vmatprep.subr.bf16.mxu0 %v1077_v6 }
  0x3f   :  { %1007 = vmatprep.subr.bf16.mxu1 %v1078_v7 }
  0x41   :  { %986 = vmatpush3.bf16.msra.mxu0 %v1079_v8 }
  0x42   :  { %1008 = vmatpush3.bf16.msra.mxu1 %v1080_v9  ;;  %987 = vmatprep.subr.bf16.mxu0 %v1081_v10 }
  0x43   :  { %1009 = vmatprep.subr.bf16.mxu1 %v1082_v11 }
  0x45   :  { %988 = vmatpush3.bf16.msra.mxu0 %v1083_v12 }
  0x46   :  { %1010 = vmatpush3.bf16.msra.mxu1 %v1084_v13 }
  0x48   :  { %736 = vmatmul.mubr.bf16.vlgmr.msra.gmra.mxu0 %v859_v14 }
  0x49   :  { %777 = vmatmul.mubr.bf16.vlgmr.msra.gmra.mxu1 %v861_v15 }
  0xe8   :  { %v945_v17 = vpop.f32.mrf.mxu0 }
  0xe9   :  { %v967_v18 = vpop.f32.mrf.mxu1 }
  0xea   :  { %v946_v19 = vpop.f32.mrf.mxu0 }
  0xeb   :  { %v968_v20 = vpop.f32.mrf.mxu1  ;;  %v947_v24 = vadd.f32 %v946_v19, %v945_v17 }
  0xec   :  { %v948_v21 = vpop.f32.mrf.mxu0  ;;  %v969_v25 = vadd.f32 %v968_v20, %v967_v18 }
  0xed   :  { %v970_v22 = vpop.f32.mrf.mxu1 }
  0xee   :  { %v949_v23 = vpop.f32.mrf.mxu0  ;;  %v697_v30 = vadd.f32 %v969_v25, %v947_v24 }
  0xef   :  { %v971_v26 = vpop.f32.mrf.mxu1  ;;  %v950_v31 = vadd.f32 %v949_v23, %v948_v21 }
  0xf0   :  { %v972_v32 = vadd.f32 %v971_v26, %v970_v22 }
  0xf2   :  { %v700_v41 = vadd.f32 %v972_v32, %v950_v31 }
 0x108   :  { %v989_v27 = vpop.f32.mrf.mxu0 }
 0x109   :  { %v1011_v28 = vpop.f32.mrf.mxu1 }
 0x10a   :  { %v990_v29 = vpop.f32.mrf.mxu0 }
 0x10b   :  { %v991_v33 = vadd.f32 %v990_v29, %v989_v27  ;;  %v1012_v34 = vpop.f32.mrf.mxu1 }
 0x10c   :  { %v992_v35 = vpop.f32.mrf.mxu0  ;;  %v1013_v37 = vadd.f32 %v1012_v34, %v1011_v28 }
 0x10d   :  { %v738_v36 = vadd.f32 %v991_v33, %v697_v30  ;;  %v1014_v38 = vpop.f32.mrf.mxu1 }
 0x10e   :  { %v993_v40 = vpop.f32.mrf.mxu0 }
 0x10f   :  { %v779_v42 = vadd.f32 %v1013_v37, %v738_v36  ;;  %v994_v43 = vadd.f32 %v993_v40, %v992_v35  ;;  %v1015_v44 = vpop.f32.mrf.mxu1 }
 0x110   :  { %v1016_v47 = vadd.f32 %v1015_v44, %v1014_v38 }
 0x111   :  { %v785_v45 = vadd.f32 %v779_v42, %v59_v39  ;;  %v741_v46 = vadd.f32 %v994_v43, %v700_v41 }
 0x113   :  { %788 = vst.msk [vmem:[#allocation2] sm:$0xff] %vm56_vm0, %v785_v45  ;;  %v782_v49 = vadd.f32 %v1016_v47, %v741_v46 }
 0x115   :  { %v786_v50 = vadd.f32 %v782_v49, %v60_v48 }
 0x117   :  { %789 = vst.msk [vmem:[#allocation2 + $0x8] sm:$0xff] %vm56_vm0, %v786_v50 }
 0x11a   :  { %v793_v52 = vld [vmem:[#allocation2] sm:$0xff] }
 0x11b   :  { %v802_v53 = vadd.f32 %v927_v51, %v793_v52 }
 0x11d   :  { %v804_v54 = vsel %vm56_vm0, %v802_v53, -inf }
 0x11e   :  { %805 = vmax.xlane.f32.xlu0 %v804_v54  ;;  %v794_v55 = vld [vmem:[#allocation2 + $0x8] sm:$0xff] }
 0x11f   :  { %v803_v56 = vadd.f32 %v927_v51, %v794_v55 }
 0x121   :  { %v807_v57 = vsel %vm56_vm0, %v803_v56, -inf }
 0x122   :  { %808 = vmax.xlane.f32.xlu0 %v807_v57 }
 0x1a7   :  { %v806_v58 = vpop.xlane.xlu0 %805 }
 0x1a8   :  { %v810_v59 = vsub.f32 %v802_v53, %v806_v58 }
 0x1aa   :  { %v812_v60 = vmul.f32 1.442695, %v810_v59 }
 0x1ab   :  { %v809_v61 = vpop.xlane.xlu0 %808 }
 0x1ac   :  { %1085 = vpow2.f32 %v812_v60  ;;  %v811_v62 = vsub.f32 %v803_v56, %v809_v61 }
 0x1ae   :  { %v814_v63 = vmul.f32 1.442695, %v811_v62 }
 0x1b0   :  { %1087 = vpow2.f32 %v814_v63 }
 0x1b9   :  { %v1086_v0 = vpop.eup %1085 }
 0x1ba   :  { %v816_v1 = vsel %vm56_vm0, %v1086_v0, 0.0 }
 0x1bb   :  { %817 = vadd.xlane.f32.xlu1 %v816_v1 }
 0x1bd   :  { %v1088_v2 = vpop.eup %1087 }
 0x1be   :  { %v819_v3 = vsel %vm56_vm0, %v1088_v2, 0.0 }
 0x1bf   :  { %820 = vadd.xlane.f32.xlu1 %v819_v3 }
 0x244   :  { %v818_v4 = vpop.xlane.xlu1 %817 }
 0x245   :  { %1089 = vrcp.f32 %v818_v4 }
 0x248   :  { %v821_v5 = vpop.xlane.xlu1 %820 }
 0x249   :  { %1091 = vrcp.f32 %v821_v5 }
 0x252   :  { %v1090_v6 = vpop.eup %1089 }
 0x253   :  { %v824_v7 = vmul.f32 %v1090_v6, %v1086_v0 }
 0x255   :  { %826 = vst.msk [vmem:[#allocation5] sm:$0xff] %vm56_vm0, %v824_v7 }
 0x256   :  { %v1092_v8 = vpop.eup %1091 }
 0x257   :  { %v825_v9 = vmul.f32 %v1092_v8, %v1088_v2 }
 0x259   :  { %827 = vst.msk [vmem:[#allocation5 + $0x8] sm:$0xff] %vm56_vm0, %v825_v9 }
 0x25a   :  { %1104 = shalt.err (!%p1101_p5)
}
 0x25b   :  { %s1117_s15 = smov 128   ;;  %s1118_s16 = smov 8  }
 0x25c   :  { %839 = dma.vmem_to_hbm [thread:$0]  %s834_s3, 256, %s1299_s4, [#allocation6], %s1117_s15, %s1117_s15, %s1118_s16  }
 0x25d   :  { %1113 = dma.done.wait [#allocation6], 256  }
 0x25e   :  { %1114 = vsyncadd [#allocation6], 4294967040 }
 0x25f   :  { %843 = vsyncpa [#allocation6], 1 }

</bundles_post_ra>
